<compile_context>
chip_gen: v6e
topology: v6e:2x2x1
jax: 0.10.0
libtpu: 0.0.40
codegen_flags: <defaults>
</compile_context>

<pallas_src>
import math

import jax
import jax.numpy as jnp
from jax.experimental import pallas as pl
from jax.experimental.pallas import tpu as pltpu


def _residual_block_kernel(x_ref, w_ref, o_ref):
    # x_ref: (1, C_in, TP)  tile of one image's flattened pixels (lanes = pixels)
    # w_ref: (C_out, C_in)  full weight, resident in VMEM (constant index_map)
    # o_ref: (1, C_out, TP)
    x = x_ref[0]  # (C_in, TP)
    conv = jnp.dot(w_ref[...], x, preferred_element_type=jnp.float32)  # (C_out, TP) f32
    # Residual add in f32 (requires C_out == C_in, same as the PyTorch module).
    o_ref[0] = (conv + x.astype(jnp.float32)).astype(o_ref.dtype)


def _vmem_budget_bytes() -> int:
    """Per-generation VMEM budget for pipeline buffers (physical minus headroom)."""
    cap = 64 << 20  # conservative default = v7x physical VMEM
    try:
        info = pltpu.get_tpu_info()
        for name in ("vmem_capacity_bytes", "vmem_bytes", "vmem_size_bytes"):
            v = getattr(info, name, None)
            if v:
                cap = int(v)
                break
    except Exception:
        pass
    if cap >= (96 << 20):
        return 96 << 20  # v5e / v6e (128 MiB physical): leave ~32 MiB headroom
    return 40 << 20      # v7x (64 MiB physical): leave ~24 MiB for Mosaic scratch


def _choose_tp(N: int, HW: int, C_in: int, C_out: int, x_itemsize: int,
               weight_bytes: int, vmem_budget: int) -> int:
    """Spatial tile (lane count) from VMEM budget, channel count, dtype and grid needs."""
    # HBM bytes moved per output lane-column (read x tile + write out tile).
    traffic_per_lane = (C_in + C_out) * x_itemsize
    # VMEM bytes per lane-column: double-buffered in/out tiles + headroom for the
    # in-kernel f32 intermediates (conv result + f32-cast residual).
    vmem_per_lane = 2 * (C_in + C_out) * x_itemsize + 4 * (C_in + C_out)

    avail = max(vmem_budget - weight_bytes - (2 << 20), 1 << 20)
    tp_vmem = (avail // vmem_per_lane) // 128 * 128
    # Target ~8 MiB of HBM traffic per grid step (amortizes ~0.35 us/step overhead).
    tp_traffic = ((8 << 20) // traffic_per_lane) // 128 * 128
    tp = max(128, min(tp_vmem, tp_traffic))

    if tp >= HW:
        tp = HW  # full-extent block (exempt from the 128-lane divisibility rule)

    # Prefer >= 4 total grid steps (v7x megacore gets work on both TCs, and
    # fetch(i+1)/writeback(i-1) overlap compute(i)), but never let per-step
    # HBM traffic drop below ~1 MiB or the tile below 128 lanes.
    while N * pl.cdiv(HW, tp) < 4:
        cand = (tp // 2) // 128 * 128
        if cand < 128 or cand * traffic_per_lane < (1 << 20):
            break
        tp = cand
    return tp


def residual_block(x_nchw: jax.Array, weight_oihw: jax.Array) -> jax.Array:
    """Pallas implementation of ResidualBlock.forward.

    x_nchw:      (N, C_in, H, W)
    weight_oihw: (C_out, C_in, 1, 1)  -- nn.Conv2d(in_f, out_f, 1, 1, bias=False).weight
    returns:     (N, C_out, H, W)  (dtype follows x; pass bf16 x/weight to halve HBM bytes)
    """
    N, C_in, H, W = x_nchw.shape
    C_out = weight_oihw.shape[0]
    assert weight_oihw.shape == (C_out, C_in, 1, 1)
    assert C_out == C_in, "residual add requires out_f == in_f (as in the PyTorch module)"

    HW = H * W
    x_mat = x_nchw.reshape(N, C_in, HW)   # contiguous reshape: no transpose, no copy
    w_mat = weight_oihw[:, :, 0, 0]       # (C_out, C_in)

    x_isz = jnp.dtype(x_nchw.dtype).itemsize
    w_isz = jnp.dtype(weight_oihw.dtype).itemsize
    # Conservative (double-buffered) weight footprint; Buffered(1) only shrinks this.
    weight_bytes = 2 * C_out * C_in * w_isz

    budget = _vmem_budget_bytes()
    TP = _choose_tp(N, HW, C_in, C_out, x_isz, weight_bytes, budget)
    grid = (N, pl.cdiv(HW, TP))  # ragged spatial tail handled by Pallas boundary blocks

    # VMEM requirement for the chosen tile, including f32 in-kernel intermediates.
    vmem_needed = (2 * (C_in + C_out) * TP * x_isz     # double-buffered in/out tiles
                   + 4 * (C_in + C_out) * TP           # f32 conv result + f32 residual cast
                   + weight_bytes)
    vmem_limit = int(min(max(vmem_needed + vmem_needed // 2, 16 << 20), budget))

    def _build(weight_spec):
        return pl.pallas_call(
            _residual_block_kernel,
            out_shape=jax.ShapeDtypeStruct((N, C_out, HW), x_nchw.dtype),
            grid_spec=pltpu.PrefetchScalarGridSpec(
                num_scalar_prefetch=0,
                grid=grid,
                in_specs=[
                    pl.BlockSpec((1, C_in, TP), lambda n, p: (n, 0, p)),
                    weight_spec,
                ],
                out_specs=pl.BlockSpec((1, C_out, TP), lambda n, p: (n, 0, p)),
            ),
            compiler_params=pltpu.CompilerParams(
                dimension_semantics=("parallel", "parallel"),
                vmem_limit_bytes=vmem_limit,
            ),
        )

    try:
        # Weight is tiny and constant across the grid: single-buffer it so the freed
        # VMEM goes to larger spatial tiles (matters for large C on v7x's 64 MiB VMEM).
        w_spec = pl.BlockSpec((C_out, C_in), lambda n, p: (0, 0),
                              pipeline_mode=pl.Buffered(1))
        out_mat = _build(w_spec)(x_mat, w_mat)
    except Exception:
        # Fallback if this Pallas version rejects single-buffering on an input spec.
        out_mat = _build(pl.BlockSpec((C_out, C_in), lambda n, p: (0, 0)))(x_mat, w_mat)

    return out_mat.reshape(N, C_out, H, W)


if __name__ == "__main__":
    key = jax.random.PRNGKey(0)
    k_x, k_w = jax.random.split(key)

    N, C, Hs, Ws = 2, 4, 16, 16  # in_f == out_f == 4
    x = jax.random.normal(k_x, (N, C, Hs, Ws), dtype=jnp.float32)

    # Deterministic Conv2d-style weight init (kaiming-uniform-like bound), shape (out_f, in_f, 1, 1)
    fan_in = C * 1 * 1
    bound = 1.0 / math.sqrt(fan_in)
    weight = jax.random.uniform(k_w, (C, C, 1, 1), minval=-bound, maxval=bound, dtype=jnp.float32)

    out = residual_block(x, weight)
    out = jax.block_until_ready(out)

    # Reference in plain JAX: 1x1 conv == per-pixel channel matmul, + residual.
    w_mat = weight[:, :, 0, 0]  # (C_out, C_in)
    ref = jnp.einsum("oc,nchw->nohw", w_mat, x) + x
    assert out.shape == (N, C, Hs, Ws)
    assert jnp.allclose(out, ref, atol=1e-5, rtol=1e-5), "mismatch vs reference"

    print("KERNEL_OK")
</pallas_src>

<mosaic_0001>
module attributes {stable_mosaic.version = 11 : i64} {
  func.func @_residual_block_kernel(%arg0: i32, %arg1: i32, %arg2: memref<1x4x256xf32, #tpu.memory_space<vmem>>, %arg3: memref<4x4xf32, #tpu.memory_space<vmem>>, %arg4: memref<1x4x256xf32, #tpu.memory_space<vmem>>) attributes {dimension_semantics = [#tpu.dimension_semantics<parallel>, #tpu.dimension_semantics<parallel>], iteration_bounds = array<i64: 2, 1>, scalar_prefetch = 0 : i64, scratch_operands = 0 : i64, tpu.core_type = #tpu.core_type<tc>, window_params = [{transform_indices = @transform_0, window_bounds = array<i64: 1, 4, 256>}, {pipeline_mode = #tpu.pipeline_mode<synchronous>, transform_indices = @transform_1, window_bounds = array<i64: 4, 4>}, {transform_indices = @transform_2, window_bounds = array<i64: 1, 4, 256>}]} {
    %c0 = arith.constant 0 : index
    %c0_0 = arith.constant 0 : index
    %c0_1 = arith.constant 0 : index
    %0 = vector.load %arg2[%c0, %c0_0, %c0_1] : memref<1x4x256xf32, #tpu.memory_space<vmem>>, vector<1x4x256xf32>
    %1 = vector.shape_cast %0 : vector<1x4x256xf32> to vector<4x256xf32>
    %c0_2 = arith.constant 0 : index
    %c0_3 = arith.constant 0 : index
    %2 = vector.load %arg3[%c0_2, %c0_3] : memref<4x4xf32, #tpu.memory_space<vmem>>, vector<4x4xf32>
    %cst = arith.constant dense<0.000000e+00> : vector<4x256xf32>
    %3 = tpu.matmul %2, %1, %cst {dimension_numbers = #tpu.dot_dimension_numbers<[1], [0], [0], [1], [0, 0, 1, 1], [], []>} : vector<4x4xf32>, vector<4x256xf32>, vector<4x256xf32> -> vector<4x256xf32>
    %4 = arith.addf %3, %1 : vector<4x256xf32>
    %c0_4 = arith.constant 0 : index
    %c0_5 = arith.constant 0 : index
    %c0_6 = arith.constant 0 : index
    %5 = vector.load %arg4[%c0_4, %c0_5, %c0_6] : memref<1x4x256xf32, #tpu.memory_space<vmem>>, vector<1x4x256xf32>
    %6 = vector.shape_cast %5 : vector<1x4x256xf32> to vector<4x256xf32>
    %7 = vector.shape_cast %4 : vector<4x256xf32> to vector<1x4x256xf32>
    tpu.vector_store %arg4[%c0_4, %c0_5, %c0_6], %7 {strides = array<i32>} : memref<1x4x256xf32, #tpu.memory_space<vmem>>, vector<1x4x256xf32>,
    return
  }
  func.func @transform_0(%arg0: i32, %arg1: i32) -> (i32, i32, i32) {
    %c0_i32 = arith.constant 0 : i32
    %c0_i32_0 = arith.constant 0 : i32
    return %arg0, %c0_i32, %arg1 : i32, i32, i32
  }
  func.func @transform_1(%arg0: i32, %arg1: i32) -> (i32, i32) {
    %c0_i32 = arith.constant 0 : i32
    %c0_i32_0 = arith.constant 0 : i32
    %c0_i32_1 = arith.constant 0 : i32
    return %c0_i32, %c0_i32_0 : i32, i32
  }
  func.func @transform_2(%arg0: i32, %arg1: i32) -> (i32, i32, i32) {
    %c0_i32 = arith.constant 0 : i32
    %c0_i32_0 = arith.constant 0 : i32
    return %arg0, %c0_i32, %arg1 : i32, i32, i32
  }
}

module attributes {stable_mosaic.version = 11 : i64} {
  func.func @_residual_block_kernel(%arg0: i32, %arg1: i32, %arg2: memref<1x4x256xf32, #tpu.memory_space<vmem>>, %arg3: memref<4x4xf32, #tpu.memory_space<vmem>>, %arg4: memref<1x4x256xf32, #tpu.memory_space<vmem>>) attributes {dimension_semantics = [#tpu.dimension_semantics<parallel>, #tpu.dimension_semantics<parallel>], iteration_bounds = array<i64: 2, 1>, scalar_prefetch = 0 : i64, scratch_operands = 0 : i64, tpu.core_type = #tpu.core_type<tc>, window_params = [{transform_indices = @transform_0, window_bounds = array<i64: 1, 4, 256>}, {pipeline_mode = #tpu.pipeline_mode<synchronous>, transform_indices = @transform_1, window_bounds = array<i64: 4, 4>}, {transform_indices = @transform_2, window_bounds = array<i64: 1, 4, 256>}]} {
    %c0 = arith.constant 0 : index
    %c0_0 = arith.constant 0 : index
    %c0_1 = arith.constant 0 : index
    %0 = vector.load %arg2[%c0, %c0_0, %c0_1] : memref<1x4x256xf32, #tpu.memory_space<vmem>>, vector<1x4x256xf32>
    %1 = vector.shape_cast %0 : vector<1x4x256xf32> to vector<4x256xf32>
    %c0_2 = arith.constant 0 : index
    %c0_3 = arith.constant 0 : index
    %2 = vector.load %arg3[%c0_2, %c0_3] : memref<4x4xf32, #tpu.memory_space<vmem>>, vector<4x4xf32>
    %cst = arith.constant dense<0.000000e+00> : vector<4x256xf32>
    %3 = tpu.matmul %2, %1, %cst {dimension_numbers = #tpu.dot_dimension_numbers<[1], [0], [0], [1], [0, 0, 1, 1], [], []>} : vector<4x4xf32>, vector<4x256xf32>, vector<4x256xf32> -> vector<4x256xf32>
    %4 = arith.addf %3, %1 : vector<4x256xf32>
    %c0_4 = arith.constant 0 : index
    %c0_5 = arith.constant 0 : index
    %c0_6 = arith.constant 0 : index
    %5 = vector.load %arg4[%c0_4, %c0_5, %c0_6] : memref<1x4x256xf32, #tpu.memory_space<vmem>>, vector<1x4x256xf32>
    %6 = vector.shape_cast %5 : vector<1x4x256xf32> to vector<4x256xf32>
    %7 = vector.shape_cast %4 : vector<4x256xf32> to vector<1x4x256xf32>
    tpu.vector_store %arg4[%c0_4, %c0_5, %c0_6], %7 {strides = array<i32>} : memref<1x4x256xf32, #tpu.memory_space<vmem>>, vector<1x4x256xf32>,
    return
  }
  func.func @transform_0(%arg0: i32, %arg1: i32) -> (i32, i32, i32) {
    %c0_i32 = arith.constant 0 : i32
    %c0_i32_0 = arith.constant 0 : i32
    return %arg0, %c0_i32, %arg1 : i32, i32, i32
  }
  func.func @transform_1(%arg0: i32, %arg1: i32) -> (i32, i32) {
    %c0_i32 = arith.constant 0 : i32
    %c0_i32_0 = arith.constant 0 : i32
    %c0_i32_1 = arith.constant 0 : i32
    return %c0_i32, %c0_i32_0 : i32, i32
  }
  func.func @transform_2(%arg0: i32, %arg1: i32) -> (i32, i32, i32) {
    %c0_i32 = arith.constant 0 : i32
    %c0_i32_0 = arith.constant 0 : i32
    return %arg0, %c0_i32, %arg1 : i32, i32, i32
  }
}

</mosaic_0001>

<bundles_post_ra>
// kernel: tpu_custom_call.1
= control target key start
LH: loop header
LB: loop body
LE: loop exit
PB: predicated region body
PF: predicated region fallthrough
CT: control target
= control target key end

     0   :  { %7 = vsyncpa [#allocation3], 0  ;;  %s811_s0 = inlined_call_operand.hbm [shape: f32[2,4,256], index: 0, kind: input, shape index: {}]   ;;  %s812_s1 = inlined_call_operand.hbm [shape: f32[4,4], index: 1, kind: input, shape index: {}]   ;;  %s813_s2 = inlined_call_operand.hbm [shape: f32[2,4,256], index: 2, kind: output, shape index: {}]  }
   0x1   :  { %9 = vsyncpa [#allocation3 + $0x1], 0 }
   0x2   :  { %10 = vsyncpa [#allocation6], 0 }
   0x3   :  { %11 = vsyncpa [#allocation4], 0 }
   0x4   :  { %13 = vsyncpa [#allocation4 + $0x1], 0  ;;  %s650_s9 = smov 0   ;;  %s652_s10 = smov 0  }
   0x5   :  { %s654_s11 = smov 0   ;;  %s656_s12 = smov 0  }
   0x6   :  { %s658_s13 = smov 0   ;;  %s660_s14 = smov 0  }
   0x7 LB: > { %s394_s15 = sadd.s32 4294967295, %s629_s14   ;;  %s395_s16 = sadd.s32 4294967294, %s629_s14   ;;  %s629_s14 = sphi %s660_s14, %s19_s14   ;;  %s625_s13 = sphi %s658_s13, %s830_s13   ;;  %s621_s12 = sphi %s656_s12, %s829_s12   ;;  %s617_s11 = sphi %s654_s11, %s828_s11   ;;  %s613_s10 = sphi %s652_s10, %s827_s10   ;;  %s609_s9 = sphi %s650_s9, %s826_s9  }
   0x8   : > { %p53_p0 = scmp.ne.s32.totalorder %s613_s10, %s609_s9  ;;  %p684_p1 = scmp.eq.s32.totalorder %s394_s15, 0 }
   0x9   : > { %p688_p2 = scmp.eq.s32.totalorder %s394_s15, 1  ;;  %p106_p3 = scmp.eq.s32.totalorder %s395_s16, 1 }
   0xa   : > { %p694_p4 = por %p684_p1, %p53_p0  ;;  %p396_p5 = scmp.ge.s32.totalorder %s629_s14, 1 }
   0xb   : > { %p699_p6 = por %p106_p3, %p53_p0  ;;  %p113_p7 = scmp.lt.s32.totalorder %s629_s14, 3 }
   0xc   : > { %s817_s19 = scalar_select %p694_p4, 1, 0 }
   0xd   : > { %s818_s20 = scalar_select %p699_p6, 1, 0 }
   0xe   : > { %p704_p8 = pnand %p396_p5, %p113_p7  ;;  %s631_s22 = smov [#allocation5]  }
   0xf   : > { %s126_s23 = sshll.u32 %s631_s22, 4  ;;  %s31_s25 = sadd.s32 1, %s625_s13  ;;  %s127_s23 = int_to_ptr.vmem [resolvable:$true] %s126_s23 }
  0x10   : > { %p424_p10 = pneg %p704_p8  ;;  %s40_s26 = sadd.s32 1, %s617_s11 }
  0x11   : > { %p33_p12 = scmp.ge.s32.totalorder %s31_s25, 2  ;;  %s502_s27 = scalar_lea.vmem %s127_s23, 64 }
  0x12   : > { %p713_p11 = pnand %p424_p10, %p684_p1  ;;  %p503_p0 = scmp.ne.s32.totalorder %s127_s23, %s502_s27 }
  0x13   : > { %p510_p7 = scmp.lt.s32.totalorder %s127_s23, %s127_s23  ;;  %p511_p6 = scmp.lt.s32.totalorder %s502_s27, %s502_s27 }
  0x14   : > { %p493_p13 = pneg %p713_p11 }
  0x15   : > { %p512_p9 = por %p511_p6, %p510_p7 }
  0x16   : > { %p505_p3 = pnand %p503_p0, %p493_p13 }
  0x18   : > { %p506_p5 = pneg %p505_p3 }
  0x1a   : > { %p513_p4 = pnand %p512_p9, %p506_p5 }
  0x1c   : > { %516 = shalt.err (!%p513_p4)
}
  0x1d   : > { %427 = dma.hbm_to_vmem [thread:$0]  (!%p713_p11), %s812_s1, 64, %s127_s23, [#allocation6]  }
  0x1e   : > { %s832_s25 = smov (%p33_p12, %s31_s25), 0  ;;  %p47_p6 = scmp.ne.s32.totalorder %s617_s11, %s613_s10 }
  0x1f   : > { %p48_p4 = scmp.eq.s32.totalorder %s629_s14, 0  ;;  %s35_s30 = ssub.s32 %s625_s13, %s832_s25 }
  0x20   : > { %p437_p9 = scmp.lt.s32.totalorder %s629_s14, 2  ;;  %p38_p10 = scmp.eq.s32.totalorder %s35_s30, 0 }
  0x21   : > { %p49_p13 = por %p48_p4, %p47_p6  ;;  %p736_p0 = por %p688_p2, %p47_p6 }
  0x22   : > { %s137_s4 = sand.u32 1, %s617_s11   ;;  %s414_s7 = sshll.u32 %s625_s13, 7 }
  0x23   : > { %s742_s5 = scalar_select %p38_p10, %s617_s11, %s40_s26  }
  0x24   : > { %s399_s6 = sshll.u32 %s137_s4, 3  ;;  %s149_s16 = scalar_lea.hbm %s811_s0, %s414_s7 }
  0x25   : > { %s141_s22 = scalar_lea.vmem [#allocation2], %s399_s6  ;;  %p748_p11 = pnand %p437_p9, %p49_p13 }
  0x26   : > { %s151_s23 = sshll.u32 %s141_s22, 4  ;;  %s138_s18 = scalar_lea.sflag [#allocation3], %s137_s4  ;;  %s152_s23 = int_to_ptr.vmem [resolvable:$true] %s151_s23 }
  0x27   : > { %p519_p2 = pneg %p748_p11  ;;  %s530_s27 = scalar_lea.vmem %s152_s23, 128 }
  0x28   : > { %p531_p12 = scmp.ne.s32.totalorder %s152_s23, %s530_s27  ;;  %s632_s26 = smov [#allocation2]  }
  0x29   : > { %s535_s28 = sshll.u32 %s632_s26, 4  ;;  %s536_s28 = int_to_ptr.vmem [resolvable:$false] %s535_s28 }
  0x2a   : > { %p533_p3 = pnand %p531_p12, %p519_p2  ;;  %s537_s29 = scalar_lea.vmem %s536_s28, 256 }
  0x2b   : > { %p538_p7 = scmp.lt.s32.totalorder %s152_s23, %s536_s28  ;;  %p539_p6 = scmp.lt.s32.totalorder %s537_s29, %s530_s27 }
  0x2c   : > { %p534_p5 = pneg %p533_p3 }
  0x2d   : > { %p540_p4 = por %p539_p6, %p538_p7 }
  0x2f   : > { %p541_p10 = pnand %p540_p4, %p534_p5 }
  0x31   : > { %544 = shalt.err (!%p541_p10)
}
  0x32   : > { %431 = dma.hbm_to_vmem [thread:$0]  (!%p748_p11), %s149_s16, 128, %s152_s23, %s138_s18  }
  0x33   : > { %160 = sbr.rel (%p704_p8) target bundleno = 276 (0x114), region = 28  ;;  %s759_s30 = sand.u32 (!%p704_p8), 1, %s613_s10  }
  0x34   : > { %s403_s4 = sshll.u32 (!%p704_p8), %s759_s30, 3  ;;  %s163_s6 = scalar_lea.sflag (!%p704_p8), [#allocation3], %s759_s30 }
  0x35   : > { %s166_s7 = scalar_lea.vmem (!%p704_p8), [#allocation2], %s403_s4  ;;  %p823_p9 = scmp.ne.s32.totalorder (!%p704_p8), %s817_s19, 0 }
  0x38   : > { %596 = dma.done.wait (%p823_p9), %s163_s6, 128  }
  0x39   : > { %598 = vsyncadd (%p823_p9), %s163_s6, 4294967168 }
  0x3a   : > { %600 = dma.done.wait (%p684_p1), [#allocation6], 64  }
  0x3b   : > { %602 = vsyncadd (%p684_p1), [#allocation6], 4294967232  ;;  %v633_v0 = vmov 0.0   ;;  %v193_v1 = vld [vmem:[%s166_s7] sm:$0xff]  ;;  %vm202_vm0 = vcmask 1043456   ;;  %vm198_vm1 = vcmask 31744  }
  0x3c   : > { %271 = vmatprep.mubr.f32.mxu0 %v633_v0  ;;  %v196_v2 = vcombine.high %v193_v1, %v193_v1  ;;  %v194_v3 = vld [vmem:[#allocation5] sm:$0xf]  ;;  %s415_s19 = sshll.u32 %s621_s12, 7  ;;  %s190_s21 = scalar_lea.vmem [#allocation7], %s403_s4 }
  0x3d   : > { %s300_s8 = sshll.u32 %s190_s21, 4  ;;  %s298_s16 = scalar_lea.hbm %s813_s2, %s415_s19  ;;  %s301_s8 = int_to_ptr.vmem [resolvable:$true] %s300_s8 }
  0x3e   : > { %406 = vmatprep.subr.msk.mxu0 %vm202_vm0, %v196_v2  ;;  %s284_s22 = scalar_lea.sflag [#allocation4], %s759_s30  ;;  %s545_s23 = scalar_lea.vmem %s301_s8, 128 }
  0x3f   : > { %407 = vmatpush1.msk.msra.mxu0 %vm202_vm0, %v193_v1  ;;  %p546_p1 = scmp.ne.s32.totalorder %s301_s8, %s545_s23  ;;  %s634_s24 = smov [#allocation7]  }
  0x40   : > { %408 = vmatmul.mubr.msk.f32.vlgmr.msra.gmra.mxu0 %vm198_vm1, %v194_v3  ;;  %s549_s18 = sshll.u32 %s634_s24, 4  ;;  %s550_s18 = int_to_ptr.vmem [resolvable:$false] %s549_s18 }
  0x41   : > { %p547_p8 = pnand %p546_p1, %p736_p0  ;;  %s551_s12 = scalar_lea.vmem %s550_s18, 256 }
  0x42   : > { %p552_p11 = scmp.lt.s32.totalorder %s301_s8, %s550_s18  ;;  %p553_p2 = scmp.lt.s32.totalorder %s551_s12, %s545_s23 }
  0x43   : > { %p548_p13 = pneg %p547_p8 }
  0x44   : > { %p554_p12 = por %p553_p2, %p552_p11 }
  0x46   : > { %p555_p3 = pnand %p554_p12, %p548_p13 }
 0x100   : > { %v273_v4 = vpop.f32.mrf.mxu0 }
 0x101   : > { %v274_v6 = vadd.f32 %v273_v4, %v193_v1 }
 0x102   : > { %v275_v5 = vpop.f32.mrf.mxu0 }
 0x103   : > { %v276_v7 = vadd.f32 %v275_v5, %v196_v2 }
 0x105   : > { %v280_v8 = vcombine.low %v274_v6, %v276_v7 }
 0x107   : > { %282 = vst [vmem:[%s190_s21] sm:$0xff] %v280_v8 }
 0x108   : > { %558 = shalt.err (!%p555_p3)
}
 0x109   : > { %s559_s27 = scalar_lea.hbm %s298_s16, 128  ;;  %s563_s29 = scalar_lea.hbm %s813_s2, 256 }
 0x10a   : > { %p560_p5 = scmp.ne.s32.totalorder %s298_s16, %s559_s27  ;;  %p564_p4 = scmp.lt.s32.totalorder %s298_s16, %s813_s2 }
 0x10b   : > { %p565_p10 = scmp.lt.s32.totalorder %s563_s29, %s559_s27 }
 0x10c   : > { %p561_p7 = pnand %p560_p5, %p736_p0 }
 0x10d   : > { %p566_p9 = por %p565_p10, %p564_p4 }
 0x10e   : > { %p562_p6 = pneg %p561_p7 }
 0x110   : > { %p567_p1 = pnand %p566_p9, %p562_p6 }
 0x112   : > { %570 = shalt.err (!%p567_p1)
}
 0x113   : > { %422 = dma.vmem_to_hbm [thread:$0]  (%p736_p0), %s301_s8, 128, %s298_s16, %s284_s22  }
 0x114 PF: > { %s312_s6 = sand.u32 1, %s609_s9   ;;  %p824_p8 = scmp.ne.s32.totalorder %s818_s20, 0 }
 0x115   : > { %p825_p13 = scmp.ge.s32.totalorder %s629_s14, 2  ;;  %s313_s7 = scalar_lea.sflag [#allocation4], %s312_s6 }
 0x117   : > { %p433_p11 = pnand %p825_p13, %p824_p8 }
 0x119   : > { %p434_p2 = pneg %p433_p11 }
 0x11b   : > { %604 = dma.done.wait (%p434_p2), %s313_s7, 128  }
 0x11c   : > { %606 = vsyncadd (%p434_p2), %s313_s7, 4294967168  ;;  %s19_s14 = sadd.s32 1, %s629_s14   ;;  %s826_s9 = smov %s613_s10 }
 0x11d   : > { %p16_p12 = scmp.ge.s32.totalorder %s19_s14, 4   ;;  %s827_s10 = smov %s617_s11 }
 0x11e   : > { %s828_s11 = smov %s742_s5  ;;  %s829_s12 = smov %s625_s13 }
 0x11f   : > { %s830_s13 = smov %s832_s25  ;;  %18 = sbr.rel (!%p16_p12) target bundleno = 7 (0x7), region = 77 }
 0x124   :  { %318 = vsyncpa [#allocation3], 1 }
 0x125   :  { %320 = vsyncpa [#allocation3 + $0x1], 1 }
 0x126   :  { %321 = vsyncpa [#allocation6], 1 }
 0x127   :  { %322 = vsyncpa [#allocation4], 1 }
 0x128   :  { %324 = vsyncpa [#allocation4 + $0x1], 1 }

// kernel: tpu_custom_call.1
= control target key start
LH: loop header
LB: loop body
LE: loop exit
PB: predicated region body
PF: predicated region fallthrough
CT: control target
= control target key end

     0   :  { %7 = vsyncpa [#allocation3], 0  ;;  %s811_s0 = inlined_call_operand.hbm [shape: f32[2,4,256], index: 0, kind: input, shape index: {}]   ;;  %s812_s1 = inlined_call_operand.hbm [shape: f32[4,4], index: 1, kind: input, shape index: {}]   ;;  %s813_s2 = inlined_call_operand.hbm [shape: f32[2,4,256], index: 2, kind: output, shape index: {}]  }
   0x1   :  { %9 = vsyncpa [#allocation3 + $0x1], 0 }
   0x2   :  { %10 = vsyncpa [#allocation6], 0 }
   0x3   :  { %11 = vsyncpa [#allocation4], 0 }
   0x4   :  { %13 = vsyncpa [#allocation4 + $0x1], 0  ;;  %s650_s9 = smov 0   ;;  %s652_s10 = smov 0  }
   0x5   :  { %s654_s11 = smov 0   ;;  %s656_s12 = smov 0  }
   0x6   :  { %s658_s13 = smov 0   ;;  %s660_s14 = smov 0  }
   0x7 LB: > { %s394_s15 = sadd.s32 4294967295, %s629_s14   ;;  %s395_s16 = sadd.s32 4294967294, %s629_s14   ;;  %s629_s14 = sphi %s660_s14, %s19_s14   ;;  %s625_s13 = sphi %s658_s13, %s830_s13   ;;  %s621_s12 = sphi %s656_s12, %s829_s12   ;;  %s617_s11 = sphi %s654_s11, %s828_s11   ;;  %s613_s10 = sphi %s652_s10, %s827_s10   ;;  %s609_s9 = sphi %s650_s9, %s826_s9  }
   0x8   : > { %p53_p0 = scmp.ne.s32.totalorder %s613_s10, %s609_s9  ;;  %p684_p1 = scmp.eq.s32.totalorder %s394_s15, 0 }
   0x9   : > { %p688_p2 = scmp.eq.s32.totalorder %s394_s15, 1  ;;  %p106_p3 = scmp.eq.s32.totalorder %s395_s16, 1 }
   0xa   : > { %p694_p4 = por %p684_p1, %p53_p0  ;;  %p396_p5 = scmp.ge.s32.totalorder %s629_s14, 1 }
   0xb   : > { %p699_p6 = por %p106_p3, %p53_p0  ;;  %p113_p7 = scmp.lt.s32.totalorder %s629_s14, 3 }
   0xc   : > { %s817_s19 = scalar_select %p694_p4, 1, 0 }
   0xd   : > { %s818_s20 = scalar_select %p699_p6, 1, 0 }
   0xe   : > { %p704_p8 = pnand %p396_p5, %p113_p7  ;;  %s631_s22 = smov [#allocation5]  }
   0xf   : > { %s126_s23 = sshll.u32 %s631_s22, 4  ;;  %s31_s25 = sadd.s32 1, %s625_s13  ;;  %s127_s23 = int_to_ptr.vmem [resolvable:$true] %s126_s23 }
  0x10   : > { %p424_p10 = pneg %p704_p8  ;;  %s40_s26 = sadd.s32 1, %s617_s11 }
  0x11   : > { %p33_p12 = scmp.ge.s32.totalorder %s31_s25, 2  ;;  %s502_s27 = scalar_lea.vmem %s127_s23, 64 }
  0x12   : > { %p713_p11 = pnand %p424_p10, %p684_p1  ;;  %p503_p0 = scmp.ne.s32.totalorder %s127_s23, %s502_s27 }
  0x13   : > { %p510_p7 = scmp.lt.s32.totalorder %s127_s23, %s127_s23  ;;  %p511_p6 = scmp.lt.s32.totalorder %s502_s27, %s502_s27 }
  0x14   : > { %p493_p13 = pneg %p713_p11 }
  0x15   : > { %p512_p9 = por %p511_p6, %p510_p7 }
  0x16   : > { %p505_p3 = pnand %p503_p0, %p493_p13 }
  0x18   : > { %p506_p5 = pneg %p505_p3 }
  0x1a   : > { %p513_p4 = pnand %p512_p9, %p506_p5 }
  0x1c   : > { %516 = shalt.err (!%p513_p4)
}
  0x1d   : > { %427 = dma.hbm_to_vmem [thread:$0]  (!%p713_p11), %s812_s1, 64, %s127_s23, [#allocation6]  }
  0x1e   : > { %s832_s25 = smov (%p33_p12, %s31_s25), 0  ;;  %p47_p6 = scmp.ne.s32.totalorder %s617_s11, %s613_s10 }
  0x1f   : > { %p48_p4 = scmp.eq.s32.totalorder %s629_s14, 0  ;;  %s35_s30 = ssub.s32 %s625_s13, %s832_s25 }
  0x20   : > { %p437_p9 = scmp.lt.s32.totalorder %s629_s14, 2  ;;  %p38_p10 = scmp.eq.s32.totalorder %s35_s30, 0 }
  0x21   : > { %p49_p13 = por %p48_p4, %p47_p6  ;;  %p736_p0 = por %p688_p2, %p47_p6 }
  0x22   : > { %s137_s4 = sand.u32 1, %s617_s11   ;;  %s414_s7 = sshll.u32 %s625_s13, 7 }
  0x23   : > { %s742_s5 = scalar_select %p38_p10, %s617_s11, %s40_s26  }
  0x24   : > { %s399_s6 = sshll.u32 %s137_s4, 3  ;;  %s149_s16 = scalar_lea.hbm %s811_s0, %s414_s7 }
  0x25   : > { %s141_s22 = scalar_lea.vmem [#allocation2], %s399_s6  ;;  %p748_p11 = pnand %p437_p9, %p49_p13 }
  0x26   : > { %s151_s23 = sshll.u32 %s141_s22, 4  ;;  %s138_s18 = scalar_lea.sflag [#allocation3], %s137_s4  ;;  %s152_s23 = int_to_ptr.vmem [resolvable:$true] %s151_s23 }
  0x27   : > { %p519_p2 = pneg %p748_p11  ;;  %s530_s27 = scalar_lea.vmem %s152_s23, 128 }
  0x28   : > { %p531_p12 = scmp.ne.s32.totalorder %s152_s23, %s530_s27  ;;  %s632_s26 = smov [#allocation2]  }
  0x29   : > { %s535_s28 = sshll.u32 %s632_s26, 4  ;;  %s536_s28 = int_to_ptr.vmem [resolvable:$false] %s535_s28 }
  0x2a   : > { %p533_p3 = pnand %p531_p12, %p519_p2  ;;  %s537_s29 = scalar_lea.vmem %s536_s28, 256 }
  0x2b   : > { %p538_p7 = scmp.lt.s32.totalorder %s152_s23, %s536_s28  ;;  %p539_p6 = scmp.lt.s32.totalorder %s537_s29, %s530_s27 }
  0x2c   : > { %p534_p5 = pneg %p533_p3 }
  0x2d   : > { %p540_p4 = por %p539_p6, %p538_p7 }
  0x2f   : > { %p541_p10 = pnand %p540_p4, %p534_p5 }
  0x31   : > { %544 = shalt.err (!%p541_p10)
}
  0x32   : > { %431 = dma.hbm_to_vmem [thread:$0]  (!%p748_p11), %s149_s16, 128, %s152_s23, %s138_s18  }
  0x33   : > { %160 = sbr.rel (%p704_p8) target bundleno = 276 (0x114), region = 28  ;;  %s759_s30 = sand.u32 (!%p704_p8), 1, %s613_s10  }
  0x34   : > { %s403_s4 = sshll.u32 (!%p704_p8), %s759_s30, 3  ;;  %s163_s6 = scalar_lea.sflag (!%p704_p8), [#allocation3], %s759_s30 }
  0x35   : > { %s166_s7 = scalar_lea.vmem (!%p704_p8), [#allocation2], %s403_s4  ;;  %p823_p9 = scmp.ne.s32.totalorder (!%p704_p8), %s817_s19, 0 }
  0x38   : > { %596 = dma.done.wait (%p823_p9), %s163_s6, 128  }
  0x39   : > { %598 = vsyncadd (%p823_p9), %s163_s6, 4294967168 }
  0x3a   : > { %600 = dma.done.wait (%p684_p1), [#allocation6], 64  }
  0x3b   : > { %602 = vsyncadd (%p684_p1), [#allocation6], 4294967232  ;;  %v633_v0 = vmov 0.0   ;;  %v193_v1 = vld [vmem:[%s166_s7] sm:$0xff]  ;;  %vm202_vm0 = vcmask 1043456   ;;  %vm198_vm1 = vcmask 31744  }
  0x3c   : > { %271 = vmatprep.mubr.f32.mxu0 %v633_v0  ;;  %v196_v2 = vcombine.high %v193_v1, %v193_v1  ;;  %v194_v3 = vld [vmem:[#allocation5] sm:$0xf]  ;;  %s415_s19 = sshll.u32 %s621_s12, 7  ;;  %s190_s21 = scalar_lea.vmem [#allocation7], %s403_s4 }
  0x3d   : > { %s300_s8 = sshll.u32 %s190_s21, 4  ;;  %s298_s16 = scalar_lea.hbm %s813_s2, %s415_s19  ;;  %s301_s8 = int_to_ptr.vmem [resolvable:$true] %s300_s8 }
  0x3e   : > { %406 = vmatprep.subr.msk.mxu0 %vm202_vm0, %v196_v2  ;;  %s284_s22 = scalar_lea.sflag [#allocation4], %s759_s30  ;;  %s545_s23 = scalar_lea.vmem %s301_s8, 128 }
  0x3f   : > { %407 = vmatpush1.msk.msra.mxu0 %vm202_vm0, %v193_v1  ;;  %p546_p1 = scmp.ne.s32.totalorder %s301_s8, %s545_s23  ;;  %s634_s24 = smov [#allocation7]  }
  0x40   : > { %408 = vmatmul.mubr.msk.f32.vlgmr.msra.gmra.mxu0 %vm198_vm1, %v194_v3  ;;  %s549_s18 = sshll.u32 %s634_s24, 4  ;;  %s550_s18 = int_to_ptr.vmem [resolvable:$false] %s549_s18 }
  0x41   : > { %p547_p8 = pnand %p546_p1, %p736_p0  ;;  %s551_s12 = scalar_lea.vmem %s550_s18, 256 }
  0x42   : > { %p552_p11 = scmp.lt.s32.totalorder %s301_s8, %s550_s18  ;;  %p553_p2 = scmp.lt.s32.totalorder %s551_s12, %s545_s23 }
  0x43   : > { %p548_p13 = pneg %p547_p8 }
  0x44   : > { %p554_p12 = por %p553_p2, %p552_p11 }
  0x46   : > { %p555_p3 = pnand %p554_p12, %p548_p13 }
 0x100   : > { %v273_v4 = vpop.f32.mrf.mxu0 }
 0x101   : > { %v274_v6 = vadd.f32 %v273_v4, %v193_v1 }
 0x102   : > { %v275_v5 = vpop.f32.mrf.mxu0 }
 0x103   : > { %v276_v7 = vadd.f32 %v275_v5, %v196_v2 }
 0x105   : > { %v280_v8 = vcombine.low %v274_v6, %v276_v7 }
 0x107   : > { %282 = vst [vmem:[%s190_s21] sm:$0xff] %v280_v8 }
 0x108   : > { %558 = shalt.err (!%p555_p3)
}
 0x109   : > { %s559_s27 = scalar_lea.hbm %s298_s16, 128  ;;  %s563_s29 = scalar_lea.hbm %s813_s2, 256 }
 0x10a   : > { %p560_p5 = scmp.ne.s32.totalorder %s298_s16, %s559_s27  ;;  %p564_p4 = scmp.lt.s32.totalorder %s298_s16, %s813_s2 }
 0x10b   : > { %p565_p10 = scmp.lt.s32.totalorder %s563_s29, %s559_s27 }
 0x10c   : > { %p561_p7 = pnand %p560_p5, %p736_p0 }
 0x10d   : > { %p566_p9 = por %p565_p10, %p564_p4 }
 0x10e   : > { %p562_p6 = pneg %p561_p7 }
 0x110   : > { %p567_p1 = pnand %p566_p9, %p562_p6 }
 0x112   : > { %570 = shalt.err (!%p567_p1)
}
 0x113   : > { %422 = dma.vmem_to_hbm [thread:$0]  (%p736_p0), %s301_s8, 128, %s298_s16, %s284_s22  }
 0x114 PF: > { %s312_s6 = sand.u32 1, %s609_s9   ;;  %p824_p8 = scmp.ne.s32.totalorder %s818_s20, 0 }
 0x115   : > { %p825_p13 = scmp.ge.s32.totalorder %s629_s14, 2  ;;  %s313_s7 = scalar_lea.sflag [#allocation4], %s312_s6 }
 0x117   : > { %p433_p11 = pnand %p825_p13, %p824_p8 }
 0x119   : > { %p434_p2 = pneg %p433_p11 }
 0x11b   : > { %604 = dma.done.wait (%p434_p2), %s313_s7, 128  }
 0x11c   : > { %606 = vsyncadd (%p434_p2), %s313_s7, 4294967168  ;;  %s19_s14 = sadd.s32 1, %s629_s14   ;;  %s826_s9 = smov %s613_s10 }
 0x11d   : > { %p16_p12 = scmp.ge.s32.totalorder %s19_s14, 4   ;;  %s827_s10 = smov %s617_s11 }
 0x11e   : > { %s828_s11 = smov %s742_s5  ;;  %s829_s12 = smov %s625_s13 }
 0x11f   : > { %s830_s13 = smov %s832_s25  ;;  %18 = sbr.rel (!%p16_p12) target bundleno = 7 (0x7), region = 77 }
 0x124   :  { %318 = vsyncpa [#allocation3], 1 }
 0x125   :  { %320 = vsyncpa [#allocation3 + $0x1], 1 }
 0x126   :  { %321 = vsyncpa [#allocation6], 1 }
 0x127   :  { %322 = vsyncpa [#allocation4], 1 }
 0x128   :  { %324 = vsyncpa [#allocation4 + $0x1], 1 }

</bundles_post_ra>
